<compile_context>
chip_gen: v6e
topology: v6e:2x2x1
jax: 0.10.0
libtpu: 0.0.40
codegen_flags: <defaults>
</compile_context>

<pallas_src>
import math

import jax
import jax.numpy as jnp
from jax.experimental import pallas as pl
from jax.experimental.pallas import tpu as pltpu

_LANES = 128
_SMALL_M_FALLBACK = 4096   # below this many rows, plain XLA matmul wins
_TM_CAP = 8192             # per-step overhead already <1% at this tile size


def _round_up(x, n):
    return (x + n - 1) // n * n


def _pack_factor(seq_len, d_model):
    """How many logical rows are packed into one kernel row.

    Output lane-density (pack*d_model multiple of 128) is mandatory: it turns the
    stores into unmasked full-lane vst (the biggest measured lever).  Input
    lane-density is added on top when seq_len divides 128 (the row-major reshape
    is then a free view).  For seq_len in 3..7 the input block stays K=pack*seq_len
    with partially masked loads, which is fine: input traffic is only
    seq_len/d_model of the output traffic.
    """
    p_out = _LANES // math.gcd(d_model, _LANES)
    if _LANES % seq_len == 0:
        p_in = _LANES // seq_len
        return p_out * p_in // math.gcd(p_out, p_in)   # lcm
    return p_out


def pack_time_feature_weight(weight, mxu_dtype=jnp.bfloat16):
    """Precompute the kernel weight from the PyTorch-layout weight.

    weight: (d_model, seq_len) -> block-diagonal W^T of shape
            (pack*seq_len, pack*d_model), stored in `mxu_dtype` (bf16 default so
            the MXU runs single-pass on every generation; accumulation stays f32
            in-kernel).  Call once at module init (hoisted out of the hot path).
    """
    d_model, seq_len = weight.shape
    pack = _pack_factor(seq_len, d_model)
    wt = weight.T.astype(mxu_dtype)            # (seq_len, d_model)
    if pack == 1:
        return wt
    eye = jnp.eye(pack, dtype=mxu_dtype)
    # wblk[p*seq_len + s, q*d_model + d] = (p == q) * wt[s, d]
    return jnp.einsum("pq,sd->psqd", eye, wt).reshape(pack * seq_len, pack * d_model)


def _linear_kernel(x_ref, w_ref, o_ref):
    # Cast activations to the weight dtype (bf16) in VMEM: cuts MXU passes ~4-6x
    # vs f32 without adding a wrapper-side HBM pass over x.  Accumulation is f32.
    x = x_ref[...].astype(w_ref.dtype)
    o_ref[...] = jnp.dot(
        x, w_ref[...], preferred_element_type=jnp.float32
    ).astype(o_ref.dtype)


def _vmem_capacity_bytes():
    try:
        return int(pltpu.get_tpu_info().vmem_capacity_bytes)
    except Exception:
        return 64 << 20   # v7x per-TensorCore — the smallest of the generations


def _choose_tm(m_packed, kn, dn, in_itemsize, w_itemsize, out_itemsize):
    """Pick the M tile from the per-generation VMEM budget; return (tm, vmem_limit)."""
    # Sublane tile of the narrowest streamed dtype (f32: 8, bf16: 16, int8: 32).
    row_tile = 32 // min(in_itemsize, out_itemsize)
    vmem_cap = _vmem_capacity_bytes()
    budget = min(int(vmem_cap * 0.6), 48 << 20)
    weight_bytes = 2 * kn * dn * w_itemsize                  # conservatively 2-buffered
    per_row = 2 * (kn * in_itemsize + dn * out_itemsize)     # double-buffered in + out
    avail = max(budget - weight_bytes, per_row * row_tile)
    tm = max(row_tile, (avail // per_row) // row_tile * row_tile)
    tm = min(tm, _TM_CAP)
    # Keep >= 2 grid steps when possible so v7x megacore can shard the M axis.
    if m_packed > row_tile:
        tm = min(tm, _round_up(pl.cdiv(m_packed, 2), row_tile))
    if tm >= m_packed:
        tm = m_packed                                        # full extent is always legal
    needed = weight_bytes + per_row * tm
    vmem_limit = int(min(vmem_cap, max(needed + (16 << 20), 32 << 20)))
    return tm, vmem_limit


def time_feature_embedding_packed(x, packed_weight, *, d_model, seq_len,
                                  out_dtype=None, force_pallas=False):
    """out[..., d_model] = x[..., seq_len] @ W^T   (bias-free nn.Linear)."""
    assert x.shape[-1] == seq_len
    pack = _pack_factor(seq_len, d_model)
    assert packed_weight.shape == (pack * seq_len, pack * d_model)
    out_dtype = x.dtype if out_dtype is None else jnp.dtype(out_dtype)

    *lead, _ = x.shape
    x2d = x.reshape(-1, seq_len)
    m = x2d.shape[0]

    # Dispatch guard: at tiny M the pallas_call launch/pipeline cost dominates
    # and XLA fuses a plain matmul with neighbouring ops.
    if not force_pallas and m < _SMALL_M_FALLBACK:
        wt = packed_weight[:seq_len, :d_model] if pack > 1 else packed_weight
        out = jnp.dot(x2d.astype(wt.dtype), wt,
                      preferred_element_type=jnp.float32).astype(out_dtype)
        return out.reshape(*lead, d_model)

    # The lane-packing reshape is a free view iff m is a multiple of `pack`;
    # only misaligned shapes pay a wrapper-side pad copy.
    m_pad = _round_up(m, pack)
    if m_pad != m:
        # TODO(synk): route the <pack-row tail through the XLA fallback instead of
        # padding, to avoid this whole-array copy on misaligned shapes.
        x2d = jnp.pad(x2d, ((0, m_pad - m), (0, 0)))

    m_packed = m_pad // pack
    kn = pack * seq_len
    dn = pack * d_model
    x_packed = x2d.reshape(m_packed, kn)        # free row-major view

    in_itemsize = x.dtype.itemsize
    w_itemsize = packed_weight.dtype.itemsize
    out_itemsize = out_dtype.itemsize
    tm, vmem_limit = _choose_tm(m_packed, kn, dn, in_itemsize, w_itemsize,
                                out_itemsize)
    grid = (pl.cdiv(m_packed, tm),)

    # Real MXU work (pack x the logical flops) and real traffic incl. the weight.
    cost = pl.CostEstimate(
        flops=2 * m_packed * kn * dn,
        transcendentals=0,
        bytes_accessed=(m_packed * kn * in_itemsize
                        + kn * dn * w_itemsize
                        + m_packed * dn * out_itemsize),
    )

    # Note: when m_packed % tm != 0 the ragged last block feeds undefined rows
    # through the MXU; every op here is row-independent so those rows are
    # harmless and never written back past the array extent.
    out_packed = pl.pallas_call(
        _linear_kernel,
        out_shape=jax.ShapeDtypeStruct((m_packed, dn), out_dtype),
        grid=grid,
        in_specs=[
            pl.BlockSpec((tm, kn), lambda i: (i, 0)),   # M-tiled activations
            pl.BlockSpec((kn, dn), lambda i: (0, 0)),   # weight resident across grid
        ],
        out_specs=pl.BlockSpec((tm, dn), lambda i: (i, 0)),
        compiler_params=pltpu.CompilerParams(
            dimension_semantics=("parallel",),          # megacore-shard M on v7x
            vmem_limit_bytes=vmem_limit,
        ),
        cost_estimate=cost,
    )(x_packed, packed_weight)

    out2d = out_packed.reshape(m_pad, d_model)
    if m_pad != m:
        out2d = out2d[:m]
    return out2d.reshape(*lead, d_model)


def time_feature_embedding(x, weight, *, mxu_dtype=jnp.bfloat16, out_dtype=None,
                           force_pallas=False):
    """Convenience wrapper taking the raw PyTorch-layout weight (d_model, seq_len).

    For repeated calls, precompute `pack_time_feature_weight(weight)` once and call
    `time_feature_embedding_packed` directly.
    """
    d_model, seq_len = weight.shape
    packed = pack_time_feature_weight(weight, mxu_dtype=mxu_dtype)
    return time_feature_embedding_packed(
        x, packed, d_model=d_model, seq_len=seq_len,
        out_dtype=out_dtype, force_pallas=force_pallas)


if __name__ == "__main__":
    # Module config (small demo shapes consistent with the module).
    seq_len = 8      # d_inp
    d_model = 32
    batch, length = 2, 8   # x: (batch, length, seq_len)

    key = jax.random.PRNGKey(0)
    kx, kw = jax.random.split(key)
    x = jax.random.normal(kx, (batch, length, seq_len), dtype=jnp.float32)
    # PyTorch nn.Linear layout: (d_model, seq_len).
    weight = jax.random.normal(kw, (d_model, seq_len), dtype=jnp.float32) * 0.1

    # Reference in plain JAX (x @ W^T).
    ref = jnp.einsum("bls,ds->bld", x, weight)

    # Production path: packed bf16 weight (hoisted, one-time), Pallas forced so
    # the kernel runs even at this tiny M.  bf16 operands, f32 accumulation/out.
    packed_bf16 = pack_time_feature_weight(weight)
    out = time_feature_embedding_packed(
        x, packed_bf16, d_model=d_model, seq_len=seq_len, force_pallas=True)
    out = jax.block_until_ready(out)
    assert out.shape == (batch, length, d_model)
    # Tolerance relaxed vs the f32 reference: error bounded by bf16 input
    # rounding (accumulation stays f32).
    assert jnp.allclose(out, ref, atol=5e-2, rtol=5e-2)

    # Full-f32 MXU path: matches the PyTorch reference tightly.
    packed_f32 = pack_time_feature_weight(weight, mxu_dtype=jnp.float32)
    out_f32 = time_feature_embedding_packed(
        x, packed_f32, d_model=d_model, seq_len=seq_len, force_pallas=True)
    out_f32 = jax.block_until_ready(out_f32)
    assert jnp.allclose(out_f32, ref, atol=1e-5, rtol=1e-5)

    # Small-M XLA fallback path (no Pallas).
    out_fb = time_feature_embedding(x, weight, mxu_dtype=jnp.float32)
    assert jnp.allclose(out_fb, ref, atol=1e-5, rtol=1e-5)

    print("KERNEL_OK")
</pallas_src>

<mosaic_0001>
module attributes {stable_mosaic.version = 11 : i64} {
  func.func @_linear_kernel(%arg0: i32, %arg1: memref<1x128xf32, #tpu.memory_space<vmem>>, %arg2: memref<128x512xbf16, #tpu.memory_space<vmem>>, %arg3: memref<1x512xf32, #tpu.memory_space<vmem>>) attributes {dimension_semantics = [#tpu.dimension_semantics<parallel>], iteration_bounds = array<i64: 1>, scalar_prefetch = 0 : i64, scratch_operands = 0 : i64, tpu.core_type = #tpu.core_type<tc>, window_params = [{transform_indices = @transform_0, window_bounds = array<i64: 1, 128>}, {pipeline_mode = #tpu.pipeline_mode<synchronous>, transform_indices = @transform_1, window_bounds = array<i64: 128, 512>}, {transform_indices = @transform_2, window_bounds = array<i64: 1, 512>}]} {
    %c0 = arith.constant 0 : index
    %c0_0 = arith.constant 0 : index
    %0 = vector.load %arg1[%c0, %c0_0] : memref<1x128xf32, #tpu.memory_space<vmem>>, vector<1x128xf32>
    %1 = arith.truncf %0 : vector<1x128xf32> to vector<1x128xbf16>
    %c0_1 = arith.constant 0 : index
    %c0_2 = arith.constant 0 : index
    %2 = vector.load %arg2[%c0_1, %c0_2] : memref<128x512xbf16, #tpu.memory_space<vmem>>, vector<128x512xbf16>
    %cst = arith.constant dense<0.000000e+00> : vector<1x512xf32>
    %3 = tpu.matmul %1, %2, %cst {dimension_numbers = #tpu.dot_dimension_numbers<[1], [0], [0], [1], [0, 0, 1, 1], [], []>} : vector<1x128xbf16>, vector<128x512xbf16>, vector<1x512xf32> -> vector<1x512xf32>
    %c0_3 = arith.constant 0 : index
    %c0_4 = arith.constant 0 : index
    %4 = vector.load %arg3[%c0_3, %c0_4] : memref<1x512xf32, #tpu.memory_space<vmem>>, vector<1x512xf32>
    tpu.vector_store %arg3[%c0_3, %c0_4], %3 {strides = array<i32>} : memref<1x512xf32, #tpu.memory_space<vmem>>, vector<1x512xf32>,
    return
  }
  func.func @transform_0(%arg0: i32) -> (i32, i32) {
    %c0_i32 = arith.constant 0 : i32
    %c0_i32_0 = arith.constant 0 : i32
    return %arg0, %c0_i32 : i32, i32
  }
  func.func @transform_1(%arg0: i32) -> (i32, i32) {
    %c0_i32 = arith.constant 0 : i32
    %c0_i32_0 = arith.constant 0 : i32
    %c0_i32_1 = arith.constant 0 : i32
    return %c0_i32, %c0_i32_0 : i32, i32
  }
  func.func @transform_2(%arg0: i32) -> (i32, i32) {
    %c0_i32 = arith.constant 0 : i32
    %c0_i32_0 = arith.constant 0 : i32
    return %arg0, %c0_i32 : i32, i32
  }
}

</mosaic_0001>

<bundles_post_ra>
// kernel: tpu_custom_call.1
= control target key start
LH: loop header
LB: loop body
LE: loop exit
PB: predicated region body
PF: predicated region fallthrough
CT: control target
= control target key end

     0   :  { %7 = vsyncpa [#allocation3], 0  ;;  %s549_s0 = inlined_call_operand.hbm [shape: f32[1,128], index: 0, kind: input, shape index: {}]   ;;  %s550_s1 = inlined_call_operand.hbm [shape: bf16[128,512], index: 1, kind: input, shape index: {}]   ;;  %s551_s2 = inlined_call_operand.hbm [shape: f32[1,512], index: 2, kind: output, shape index: {}]  }
   0x1   :  { %8 = vsyncpa [#allocation6], 0 }
   0x2   :  { %9 = vsyncpa [#allocation4], 0  ;;  %s518_s9 = smov [#allocation2]   ;;  %s519_s11 = smov [#allocation5]  }
   0x3   :  { %s16_s10 = sshll.u32 %s518_s9, 4  ;;  %s25_s12 = sshll.u32 %s519_s11, 4  ;;  %s17_s10 = int_to_ptr.vmem [resolvable:$true] %s16_s10  ;;  %s26_s12 = int_to_ptr.vmem [resolvable:$true] %s25_s12 }
   0x4   :  { %s460_s13 = scalar_lea.vmem %s17_s10, 16  ;;  %s464_s14 = scalar_lea.vmem %s17_s10, 32 }
   0x5   :  { %p461_p0 = scmp.ne.s32.totalorder %s17_s10, %s460_s13  ;;  %p465_p1 = scmp.lt.s32.totalorder %s17_s10, %s17_s10 }
   0x6   :  { %p466_p2 = scmp.lt.s32.totalorder %s464_s14, %s460_s13 }
   0x8   :  { %p467_p3 = por %p466_p2, %p465_p1 }
   0xa   :  { %p468_p4 = pnand %p467_p3, %p461_p0 }
   0xc   :  { %471 = shalt.err (!%p468_p4)
}
   0xd   :  { %19 = dma.hbm_to_vmem [thread:$0]  %s549_s0, 16, %s17_s10, [#allocation3]  }
   0xe   :  { %s480_s17 = scalar_lea.vmem %s26_s12, 4096  ;;  %p485_p6 = scmp.lt.s32.totalorder %s26_s12, %s26_s12 }
   0xf   :  { %p481_p5 = scmp.ne.s32.totalorder %s26_s12, %s480_s17  ;;  %p486_p7 = scmp.lt.s32.totalorder %s480_s17, %s480_s17 }
  0x11   :  { %p487_p8 = por %p486_p7, %p485_p6 }
  0x13   :  { %p488_p9 = pnand %p487_p8, %p481_p5 }
  0x15   :  { %491 = shalt.err (!%p488_p9)
}
  0x16   :  { %s520_s18 = smov 256   ;;  %s521_s19 = smov 16  }
  0x17   :  { %31 = dma.hbm_to_vmem [thread:$0]  %s550_s1, 4096, %s26_s12, [#allocation6], %s520_s18, %s520_s18, %s521_s19  }
  0x18   :  { %512 = dma.done.wait [#allocation3], 16  }
  0x19   :  { %513 = vsyncadd [#allocation3], 4294967280 }
  0x1a   :  { %514 = dma.done.wait [#allocation6], 4096  }
  0x1b   :  { %515 = vsyncadd [#allocation6], 4294963200  ;;  %v522_v0 = vmov 0   ;;  %v404_v1 = vld [vmem:[#allocation5 + $0xe4] ss:$16 sps:$4 sm:$0xff]   ;;  %v324_v37 = vlaneseq  ;;  %s524_s0 = smov [#allocation7]  }
  0x1c   :  { %265 = vmatprep.mubr.bf16.mxu0 %v522_v0  ;;  %306 = vmatprep.mubr.bf16.mxu1 %v522_v0  ;;  %v406_v2 = vld [vmem:[#allocation5 + $0xec] ss:$16 sps:$4 sm:$0xff]   ;;  %v408_v3 = vld [vmem:[#allocation5 + $0xe0] ss:$16 sps:$4 sm:$0xff]   ;;  %v409_v4 = vld [vmem:[#allocation5 + $0xe8] ss:$16 sps:$4 sm:$0xff]  }
  0x1d   :  { %233 = vmatprep.subr.bf16.mxu0 %v404_v1  ;;  %274 = vmatprep.subr.bf16.mxu1 %v406_v2  ;;  %v410_v5 = vld [vmem:[#allocation5 + $0xc4] ss:$16 sps:$4 sm:$0xff]   ;;  %v412_v6 = vld [vmem:[#allocation5 + $0xcc] ss:$16 sps:$4 sm:$0xff]   ;;  %v414_v7 = vld [vmem:[#allocation5 + $0xc0] ss:$16 sps:$4 sm:$0xff]  }
  0x1e   :  { %234 = vmatpush1.bf16.msra.mxu0 %v408_v3  ;;  %275 = vmatpush1.bf16.msra.mxu1 %v409_v4  ;;  %v415_v8 = vld [vmem:[#allocation5 + $0xc8] ss:$16 sps:$4 sm:$0xff]   ;;  %v416_v9 = vld [vmem:[#allocation5 + $0xa4] ss:$16 sps:$4 sm:$0xff]   ;;  %v418_v10 = vld [vmem:[#allocation5 + $0xac] ss:$16 sps:$4 sm:$0xff]  }
  0x1f   :  { %235 = vmatprep.subr.bf16.mxu0 %v410_v5  ;;  %276 = vmatprep.subr.bf16.mxu1 %v412_v6  ;;  %v420_v11 = vld [vmem:[#allocation5 + $0xa0] ss:$16 sps:$4 sm:$0xff]   ;;  %v421_v12 = vld [vmem:[#allocation5 + $0xa8] ss:$16 sps:$4 sm:$0xff]   ;;  %v422_v13 = vld [vmem:[#allocation5 + $0x84] ss:$16 sps:$4 sm:$0xff]  }
  0x20   :  { %v424_v14 = vld [vmem:[#allocation5 + $0x8c] ss:$16 sps:$4 sm:$0xff]   ;;  %v426_v15 = vld [vmem:[#allocation5 + $0x80] ss:$16 sps:$4 sm:$0xff]   ;;  %v427_v16 = vld [vmem:[#allocation5 + $0x88] ss:$16 sps:$4 sm:$0xff]  }
  0x21   :  { %v428_v17 = vld [vmem:[#allocation5 + $0x64] ss:$16 sps:$4 sm:$0xff]   ;;  %v430_v18 = vld [vmem:[#allocation5 + $0x6c] ss:$16 sps:$4 sm:$0xff]   ;;  %v432_v19 = vld [vmem:[#allocation5 + $0x60] ss:$16 sps:$4 sm:$0xff]  }
  0x22   :  { %236 = vmatpush1.bf16.msra.mxu0 %v414_v7  ;;  %277 = vmatpush1.bf16.msra.mxu1 %v415_v8  ;;  %v433_v20 = vld [vmem:[#allocation5 + $0x68] ss:$16 sps:$4 sm:$0xff]   ;;  %v434_v21 = vld [vmem:[#allocation5 + $0x44] ss:$16 sps:$4 sm:$0xff]   ;;  %v436_v22 = vld [vmem:[#allocation5 + $0x4c] ss:$16 sps:$4 sm:$0xff]  }
  0x23   :  { %237 = vmatprep.subr.bf16.mxu0 %v416_v9  ;;  %278 = vmatprep.subr.bf16.mxu1 %v418_v10  ;;  %v438_v23 = vld [vmem:[#allocation5 + $0x40] ss:$16 sps:$4 sm:$0xff]   ;;  %v439_v24 = vld [vmem:[#allocation5 + $0x48] ss:$16 sps:$4 sm:$0xff]   ;;  %v440_v25 = vld [vmem:[#allocation5 + $0x24] ss:$16 sps:$4 sm:$0xff]  }
  0x24   :  { %v442_v26 = vld [vmem:[#allocation5 + $0x2c] ss:$16 sps:$4 sm:$0xff]   ;;  %v444_v27 = vld [vmem:[#allocation5 + $0x20] ss:$16 sps:$4 sm:$0xff]   ;;  %v445_v28 = vld [vmem:[#allocation5 + $0x28] ss:$16 sps:$4 sm:$0xff]  }
  0x25   :  { %v446_v29 = vld [vmem:[#allocation5 + $0x4] ss:$16 sps:$4 sm:$0xff]   ;;  %v448_v30 = vld [vmem:[#allocation5 + $0xc] ss:$16 sps:$4 sm:$0xff]   ;;  %v450_v31 = vld [vmem:[#allocation5] ss:$16 sps:$4 sm:$0xff]  }
  0x26   :  { %238 = vmatpush1.bf16.msra.mxu0 %v420_v11  ;;  %279 = vmatpush1.bf16.msra.mxu1 %v421_v12  ;;  %v451_v32 = vld [vmem:[#allocation5 + $0x8] ss:$16 sps:$4 sm:$0xff]   ;;  %v39_v33 = vld [vmem:[#allocation2] sm:$0x1]  ;;  %v523_v35 = vmov 1966171168  }
  0x27   :  { %239 = vmatprep.subr.bf16.mxu0 %v422_v13  ;;  %280 = vmatprep.subr.bf16.mxu1 %v424_v14  ;;  %v40_v34 = vpack.c.bf16 %v39_v33, %v39_v33  ;;  %v322_v36 = vunpack.c.l.s4 %v523_v35  ;;  %v325_v39 = vshrl.u32 %v324_v37, 7  ;;  %s355_s1 = sshll.u32 %s524_s0, 4  ;;  %vm346_vm0 = vcmp.lt.s32.totalorder %v324_v37, 512  ;;  %s356_s1 = int_to_ptr.vmem [resolvable:$true] %s355_s1 }
  0x28   :  { %s492_s22 = scalar_lea.vmem %s356_s1, 64  ;;  %p497_p11 = scmp.lt.s32.totalorder %s356_s1, %s356_s1 }
  0x29   :  { %v323_v38 = vunpack.c.0.s8 %v322_v36  ;;  %p493_p10 = scmp.ne.s32.totalorder %s356_s1, %s492_s22  ;;  %p498_p12 = scmp.lt.s32.totalorder %s492_s22, %s492_s22 }
  0x2a   :  { %240 = vmatpush1.bf16.msra.mxu0 %v426_v15  ;;  %281 = vmatpush1.bf16.msra.mxu1 %v427_v16 }
  0x2b   :  { %241 = vmatprep.subr.bf16.mxu0 %v428_v17  ;;  %282 = vmatprep.subr.bf16.mxu1 %v430_v18  ;;  %v326_v42 = vsub.s32 %v323_v38, %v325_v39  ;;  %p499_p13 = por %p498_p12, %p497_p11 }
  0x2d   :  { %p500_p0 = pnand %p499_p13, %p493_p10 }
  0x2e   :  { %242 = vmatpush1.bf16.msra.mxu0 %v432_v19  ;;  %283 = vmatpush1.bf16.msra.mxu1 %v433_v20 }
  0x2f   :  { %243 = vmatprep.subr.bf16.mxu0 %v434_v21  ;;  %284 = vmatprep.subr.bf16.mxu1 %v436_v22 }
  0x32   :  { %244 = vmatpush1.bf16.msra.mxu0 %v438_v23  ;;  %285 = vmatpush1.bf16.msra.mxu1 %v439_v24 }
  0x33   :  { %245 = vmatprep.subr.bf16.mxu0 %v440_v25  ;;  %286 = vmatprep.subr.bf16.mxu1 %v442_v26 }
  0x36   :  { %246 = vmatpush1.bf16.msra.mxu0 %v444_v27  ;;  %287 = vmatpush1.bf16.msra.mxu1 %v445_v28 }
  0x37   :  { %247 = vmatprep.subr.bf16.mxu0 %v446_v29  ;;  %288 = vmatprep.subr.bf16.mxu1 %v448_v30 }
  0x3a   :  { %248 = vmatpush1.bf16.msra.mxu0 %v450_v31  ;;  %289 = vmatpush1.bf16.msra.mxu1 %v451_v32 }
  0x3d   :  { %266 = vmatmul.mubr.bf16.vlgmr.msra.gmra.mxu0 %v40_v34  ;;  %307 = vmatmul.mubr.bf16.vlgmr.msra.gmra.mxu1 %v40_v34 }
  0xfd   :  { %v267_v40 = vpop.f32.mrf.mxu0  ;;  %v308_v41 = vpop.f32.mrf.mxu1 }
  0xff   :  { %v269_v43 = vpop.f32.mrf.mxu0  ;;  %v310_v44 = vpop.f32.mrf.mxu1 }
 0x100   :  { %v319_v45 = vcombine.low %v267_v40, %v269_v43  ;;  %v320_v46 = vcombine.low %v308_v41, %v310_v44 }
 0x101   :  { %v271_v47 = vpop.f32.mrf.mxu0  ;;  %v312_v48 = vpop.f32.mrf.mxu1 }
 0x102   :  { %v327_v49 = vrot.slane %v319_v45, %v326_v42  ;;  %v334_v50 = vrot.slane %v320_v46, %v326_v42 }
 0x103   :  { %v272_v51 = vpop.f32.mrf.mxu0  ;;  %v313_v52 = vpop.f32.mrf.mxu1 }
 0x104   :  { %v335_v53 = vcombine.low %v327_v49, %v334_v50 }
 0x106   :  { %v342_v54 = vrot.slane %v335_v53, %v326_v42 }
 0x108   :  { %348 = vst.msk [vmem:[#allocation7] sm:$0xf] %vm346_vm0, %v342_v54 }
 0x109   :  { %503 = shalt.err (!%p500_p0)
}
 0x10a   :  { %358 = dma.vmem_to_hbm [thread:$0]  %s356_s1, 64, %s551_s2, [#allocation4]  }
 0x10b   :  { %516 = dma.done.wait [#allocation4], 64  }
 0x10c   :  { %517 = vsyncadd [#allocation4], 4294967232 }
 0x10d   :  { %362 = vsyncpa [#allocation3], 1 }
 0x10e   :  { %363 = vsyncpa [#allocation6], 1 }
 0x10f   :  { %364 = vsyncpa [#allocation4], 1 }

</bundles_post_ra>
